<compile_context>
chip_gen: v5e
topology: v5e:2x2
jax: 0.10.0
libtpu: 0.0.40
codegen_flags: <defaults>
</compile_context>

<pallas_src>
import jax
import jax.numpy as jnp
from jax.experimental import pallas as pl
from jax.experimental.pallas import tpu as pltpu


def _round_up(x, m):
    return (x + m - 1) // m * m


def _pick_latent_tile(L, target):
    """Target latent tile: full (128-padded) L when small, else a 256 multiple."""
    L128 = _round_up(L, 128)
    if L128 <= target:
        return L128
    return max(256, (target // 256) * 256)


def _fit_latent_tile(L_p, tl_max):
    """Largest multiple of 128 that is <= tl_max and divides L_p (L_p % 128 == 0)."""
    tl = max(128, min((tl_max // 128) * 128, L_p))
    while L_p % tl != 0:
        tl -= 128
    return tl


def _pick_row_tile(rows, target):
    if rows <= 256:
        return _round_up(rows, 16)                 # single small tile
    if rows <= 2 * target:
        return _round_up((rows + 1) // 2, 16)      # exactly 2 row tiles (v7x megacore)
    return max(256, (target // 256) * 256)         # MXU-width multiple on v6e/v7x


def prepare_crosscoder_weights(w_enc, *, latent_tile=1024, compute_dtype=jnp.bfloat16):
    """Flatten/pad/cast the tied encoder weight ONCE.

    w_enc: [C, L, H] (PyTorch nn.Linear layout per layer). Returns the shared
    encoder/decoder slab W[c*H + h, l] with the latent axis zero-padded to a
    multiple of the latent tile, in compute_dtype. Cache the result and pass it
    via crosscoder_forward(..., w_prepared=...) to avoid re-doing this full
    read+write HBM pass on every forward.
    """
    C, L, H = w_enc.shape
    tl = _pick_latent_tile(L, latent_tile)
    L_p = _round_up(L, tl)
    w_flat = jnp.transpose(w_enc, (0, 2, 1)).reshape(C * H, L)
    if L_p != L:
        w_flat = jnp.pad(w_flat, ((0, 0), (0, L_p - L)))
    return w_flat.astype(compute_dtype)


def _make_kernel(theta, multi_latent_tiles):
    def _compute(x_ref, w_ref, b_ref):
        w = w_ref[...]
        xb = x_ref[...].astype(w.dtype)            # in-kernel cast (VPU, free filler)
        pre = jnp.dot(xb, w, preferred_element_type=jnp.float32) + b_ref[...]
        if theta is not None:
            latents = jnp.where(pre > theta, pre, jnp.zeros_like(pre))
        else:
            latents = jnp.maximum(pre, 0.0)
        # Tied decoder: contract latent axis of (tm, tl) with axis 1 of (CH, tl).
        xhat_part = jax.lax.dot_general(
            latents.astype(w.dtype), w,
            dimension_numbers=(((1,), (1,)), ((), ())),
            preferred_element_type=jnp.float32)
        return latents, xhat_part

    if not multi_latent_tiles:
        # Single full-width latent tile: weight & bias VMEM-resident, no acc scratch.
        def kernel(x_ref, w_ref, b_ref, lat_ref, xhat_ref):
            latents, xhat = _compute(x_ref, w_ref, b_ref)
            lat_ref[...] = latents.astype(lat_ref.dtype)
            xhat_ref[...] = xhat.astype(xhat_ref.dtype)
        return kernel

    def kernel(x_ref, w_ref, b_ref, lat_ref, xhat_ref, acc_ref):
        j = pl.program_id(1)

        @pl.when(j == 0)
        def _():
            acc_ref[...] = jnp.zeros_like(acc_ref)

        latents, xhat_part = _compute(x_ref, w_ref, b_ref)
        lat_ref[...] = latents.astype(lat_ref.dtype)
        acc_ref[...] += xhat_part

        @pl.when(j == pl.num_programs(1) - 1)
        def _():
            xhat_ref[...] = acc_ref[...].astype(xhat_ref.dtype)

    return kernel


def crosscoder_forward(x, w_enc, latent_bias, *, theta=None,
                       row_tile=512, latent_tile=1024,
                       compute_dtype=jnp.bfloat16, latents_dtype=None,
                       w_prepared=None):
    """Crosscoder forward (tied decoder weights).

    x:           [B, S, Lyr, H]; only the first C layer slices are used
                 (matches the module's x[:, :, i, :] loop), Lyr >= C.
    w_enc:       [C, L, H] stacked encoder weights (nn.Linear layout).
    latent_bias: [L]
    theta:       optional static float -> jump-ReLU instead of ReLU.
    w_prepared:  optional cached output of prepare_crosscoder_weights().
    Returns (latents [B, S, L] in latents_dtype (default bf16),
             x_hat [B, S, C, H] in x.dtype).
    """
    B, S, n_layers_in, H = x.shape
    C, L, H_w = w_enc.shape
    assert H_w == H and n_layers_in >= C
    CH = C * H
    rows = B * S
    if latents_dtype is None:
        latents_dtype = compute_dtype              # bf16 halves the rows x L writeback

    if w_prepared is None:
        # NOTE: cache this across calls (prepare_crosscoder_weights) for repeated forwards.
        w_prepared = prepare_crosscoder_weights(
            w_enc, latent_tile=latent_tile, compute_dtype=compute_dtype)
    assert w_prepared.shape[0] == CH
    L_p = int(w_prepared.shape[1])
    assert L_p >= L and L_p % 128 == 0

    # Latent bias (f32 for the accumulate), padded to L_p.
    b = latent_bias.astype(jnp.float32)
    if L_p != L:
        b = jnp.pad(b, (0, L_p - L))
    b = b.reshape(1, L_p)

    # Only the first C layer slices of x participate (module semantics).
    # Kept in x.dtype; the compute-dtype cast happens per tile inside the kernel.
    x2d = x[:, :, :C, :].reshape(rows, CH)

    # ---- Generation-aware VMEM budget -------------------------------------
    try:
        vmem_cap = int(pltpu.get_tpu_info().vmem_capacity_bytes)
    except Exception:
        vmem_cap = 128 * 1024 * 1024
    # ~48 MiB on v7x (64 MiB physical, leave headroom), ~96 MiB on v5e/v6e.
    vmem_limit = int(min(vmem_cap * 3 // 4, 100 * 1024 * 1024))
    budget = int(vmem_limit * 0.85)                # headroom for compiler scratch

    x_bytes = jnp.dtype(x.dtype).itemsize
    w_bytes = jnp.dtype(compute_dtype).itemsize
    lat_bytes = jnp.dtype(latents_dtype).itemsize
    out_bytes = jnp.dtype(x.dtype).itemsize

    def vmem_usage(tm_, tl_):
        use = 2 * tm_ * CH * x_bytes               # x input tiles (double buffered)
        use += 2 * CH * tl_ * w_bytes              # weight slab
        use += 2 * tl_ * 4                         # bias
        use += 2 * tm_ * tl_ * lat_bytes           # latents output tiles
        use += 2 * tm_ * CH * out_bytes            # x_hat output tiles
        if tl_ < L_p:
            use += tm_ * CH * 4                    # f32 acc only when latent axis is tiled
        return use

    tm = _pick_row_tile(rows, row_tile)
    tl = _fit_latent_tile(L_p, _pick_latent_tile(L, latent_tile))

    # Tier 1: full-width latent tile -> weight & bias become constant-index full
    # blocks, DMA'd from HBM exactly once for the entire grid (fully resident).
    resident_tm = None
    for tm_try in sorted({tm} | set(range(256, tm, 256)), reverse=True):
        if vmem_usage(tm_try, L_p) <= budget:
            resident_tm = tm_try
            break
    if resident_tm is not None:
        tm, tl = resident_tm, L_p
    else:
        # Tier 2: stream the weight over latent tiles. Shrink tl first (only costs
        # accumulator-RMW amortization), keep tm large (weight-stream intensity
        # = 2*tm flops/byte must clear the v6e ~680 flops/byte roofline).
        while vmem_usage(tm, tl) > budget:
            if tl > 256:
                tl = _fit_latent_tile(L_p, tl - 128)
            elif tm > 256:
                tm = max(256, _round_up(tm // 2, 256))
            elif tl > 128:
                tl = 128
            elif tm > 16:
                tm = max(16, _round_up(tm // 2, 16))
            else:
                break

    rows_p = _round_up(rows, tm)
    if rows_p != rows:
        x2d = jnp.pad(x2d, ((0, rows_p - rows), (0, 0)))

    grid = (rows_p // tm, L_p // tl)
    multi_j = grid[1] > 1

    if multi_j:
        w_spec = pl.BlockSpec((CH, tl), lambda i, j: (0, j))      # streamed weight slab
        b_spec = pl.BlockSpec((1, tl), lambda i, j: (0, j))
        scratch = [pltpu.VMEM((tm, CH), jnp.float32)]             # x_hat accumulator
    else:
        # Fully VMEM-resident weight & bias (constant block index -> single DMA).
        w_spec = pl.BlockSpec((CH, L_p), lambda i, j: (0, 0))
        b_spec = pl.BlockSpec((1, L_p), lambda i, j: (0, 0))
        scratch = []

    w_reads = 1 if not multi_j else grid[0]        # streamed W is re-read per row tile
    bytes_accessed = (x2d.size * x_bytes
                      + w_prepared.size * w_bytes * w_reads
                      + b.size * 4
                      + rows_p * L_p * lat_bytes
                      + rows_p * CH * out_bytes)
    cost = pl.CostEstimate(flops=4 * rows_p * CH * L_p,           # encoder + decoder matmuls
                           transcendentals=0,
                           bytes_accessed=int(bytes_accessed))

    latents, x_hat = pl.pallas_call(
        _make_kernel(theta, multi_j),
        out_shape=(jax.ShapeDtypeStruct((rows_p, L_p), latents_dtype),
                   jax.ShapeDtypeStruct((rows_p, CH), x.dtype)),
        grid_spec=pltpu.PrefetchScalarGridSpec(
            num_scalar_prefetch=0,
            grid=grid,
            in_specs=[
                pl.BlockSpec((tm, CH), lambda i, j: (i, 0)),      # x row tile (cast in-kernel)
                w_spec,                                           # shared (tied) weight
                b_spec,                                           # latent bias
            ],
            out_specs=[
                pl.BlockSpec((tm, tl), lambda i, j: (i, j)),      # latents
                pl.BlockSpec((tm, CH), lambda i, j: (i, 0)),      # x_hat (revisited over j)
            ],
            scratch_shapes=scratch,
        ),
        compiler_params=pltpu.CompilerParams(
            dimension_semantics=("parallel", "arbitrary"),
            vmem_limit_bytes=vmem_limit),
        cost_estimate=cost,
    )(x2d, w_prepared, b)

    latents = latents[:rows, :L].reshape(B, S, L)
    x_hat = x_hat[:rows].reshape(B, S, C, H)
    return latents, x_hat


if __name__ == "__main__":
    batch, seq = 2, 8
    hidden_size, n_layers, latent_size = 128, 8, 256
    start_layer = n_layers // 4
    end_layer = n_layers * 3 // 4 + 1
    C = end_layer - start_layer            # number of encoder/decoder Linears = 5

    key = jax.random.PRNGKey(0)
    k_x, k_w, k_b = jax.random.split(key, 3)

    # x matches the module docstring: [batch, max_length, n_layers, hidden].
    x = jax.random.normal(k_x, (batch, seq, n_layers, hidden_size), jnp.float32)
    # Stacked encoder weights, PyTorch nn.Linear layout [latent, hidden] per layer.
    w_enc = 0.03 * jax.random.normal(
        k_w, (C, latent_size, hidden_size), dtype=jnp.float32)
    # Module initializes latent_bias to zeros; use small values to exercise it.
    latent_bias = 0.1 * jax.random.normal(k_b, (latent_size,), dtype=jnp.float32)

    # Weight prep hoisted out of the forward (cacheable across calls).
    w_prep = prepare_crosscoder_weights(w_enc)
    latents, x_hat = crosscoder_forward(x, w_enc, latent_bias, w_prepared=w_prep)
    jax.block_until_ready((latents, x_hat))

    # ---- Pure-JAX references -------------------------------------------------
    x_used = x[:, :, :C, :]
    hp = jax.lax.Precision.HIGHEST

    def reference(xr, wr):
        pre = jnp.einsum("bsch,clh->bsl", xr, wr, precision=hp) + latent_bias
        lat = jnp.maximum(pre, 0.0)
        xh = jnp.einsum("bsl,clh->bsch", lat, wr, precision=hp)
        return lat, xh

    # (a) exact f32 module math (loose tolerance: kernel computes in bf16).
    lat_f32, xh_f32 = reference(x_used, w_enc)
    # (b) same module math on bf16-quantized inputs (matches kernel numerics).
    lat_q, xh_q = reference(x_used.astype(jnp.bfloat16).astype(jnp.float32),
                            w_enc.astype(jnp.bfloat16).astype(jnp.float32))

    lat_out = latents.astype(jnp.float32)
    xh_out = x_hat.astype(jnp.float32)

    assert latents.shape == (batch, seq, latent_size)
    assert x_hat.shape == (batch, seq, C, hidden_size)
    assert jnp.allclose(lat_out, lat_q, atol=2e-2, rtol=2e-2)
    assert jnp.allclose(xh_out, xh_q, atol=2e-2, rtol=2e-2)
    assert jnp.allclose(lat_out, lat_f32, atol=5e-2, rtol=5e-2)
    assert jnp.allclose(xh_out, xh_f32, atol=5e-2, rtol=5e-2)

    print("KERNEL_OK")
</pallas_src>

<mosaic_0001>
module attributes {stable_mosaic.version = 11 : i64} {
  func.func @kernel(%arg0: i32, %arg1: i32, %arg2: memref<16x640xf32, #tpu.memory_space<vmem>>, %arg3: memref<640x256xbf16, #tpu.memory_space<vmem>>, %arg4: memref<1x256xf32, #tpu.memory_space<vmem>>, %arg5: memref<16x256xbf16, #tpu.memory_space<vmem>>, %arg6: memref<16x640xf32, #tpu.memory_space<vmem>>) attributes {dimension_semantics = [#tpu.dimension_semantics<parallel>, #tpu.dimension_semantics<arbitrary>], iteration_bounds = array<i64: 1, 1>, scalar_prefetch = 0 : i64, scratch_operands = 0 : i64, tpu.core_type = #tpu.core_type<tc>, window_params = [{transform_indices = @transform_0, window_bounds = array<i64: 16, 640>}, {pipeline_mode = #tpu.pipeline_mode<synchronous>, transform_indices = @transform_1, window_bounds = array<i64: 640, 256>}, {pipeline_mode = #tpu.pipeline_mode<synchronous>, transform_indices = @transform_2, window_bounds = array<i64: 1, 256>}, {transform_indices = @transform_3, window_bounds = array<i64: 16, 256>}, {transform_indices = @transform_4, window_bounds = array<i64: 16, 640>}]} {
    %c0 = arith.constant 0 : index
    %c0_0 = arith.constant 0 : index
    %0 = vector.load %arg3[%c0, %c0_0] : memref<640x256xbf16, #tpu.memory_space<vmem>>, vector<640x256xbf16>
    %c0_1 = arith.constant 0 : index
    %c0_2 = arith.constant 0 : index
    %1 = vector.load %arg2[%c0_1, %c0_2] : memref<16x640xf32, #tpu.memory_space<vmem>>, vector<16x640xf32>
    %2 = arith.truncf %1 : vector<16x640xf32> to vector<16x640xbf16>
    %cst = arith.constant dense<0.000000e+00> : vector<16x256xf32>
    %3 = tpu.matmul %2, %0, %cst {dimension_numbers = #tpu.dot_dimension_numbers<[1], [0], [0], [1], [0, 0, 1, 1], [], []>} : vector<16x640xbf16>, vector<640x256xbf16>, vector<16x256xf32> -> vector<16x256xf32>
    %c0_3 = arith.constant 0 : index
    %c0_4 = arith.constant 0 : index
    %4 = vector.load %arg4[%c0_3, %c0_4] : memref<1x256xf32, #tpu.memory_space<vmem>>, vector<1x256xf32>
    %5 = vector.broadcast %4 : vector<1x256xf32> to vector<16x256xf32>
    %6 = arith.addf %3, %5 : vector<16x256xf32>
    %cst_5 = arith.constant 0.000000e+00 : f32
    %7 = vector.broadcast %cst_5 : f32 to vector<16x256xf32>
    %8 = arith.maximumf %6, %7 : vector<16x256xf32>
    %9 = arith.truncf %8 : vector<16x256xf32> to vector<16x256xbf16>
    %cst_6 = arith.constant dense<0.000000e+00> : vector<16x640xf32>
    %10 = tpu.matmul %9, %0, %cst_6 {dimension_numbers = #tpu.dot_dimension_numbers<[1], [1], [0], [0], [0, 0, 1, 0], [], []>} : vector<16x256xbf16>, vector<640x256xbf16>, vector<16x640xf32> -> vector<16x640xf32>
    %11 = arith.truncf %8 : vector<16x256xf32> to vector<16x256xbf16>
    %c0_7 = arith.constant 0 : index
    %c0_8 = arith.constant 0 : index
    %12 = vector.load %arg5[%c0_7, %c0_8] : memref<16x256xbf16, #tpu.memory_space<vmem>>, vector<16x256xbf16>
    tpu.vector_store %arg5[%c0_7, %c0_8], %11 {strides = array<i32>} : memref<16x256xbf16, #tpu.memory_space<vmem>>, vector<16x256xbf16>,
    %c0_9 = arith.constant 0 : index
    %c0_10 = arith.constant 0 : index
    %13 = vector.load %arg6[%c0_9, %c0_10] : memref<16x640xf32, #tpu.memory_space<vmem>>, vector<16x640xf32>
    tpu.vector_store %arg6[%c0_9, %c0_10], %10 {strides = array<i32>} : memref<16x640xf32, #tpu.memory_space<vmem>>, vector<16x640xf32>,
    return
  }
  func.func @transform_0(%arg0: i32, %arg1: i32) -> (i32, i32) {
    %c0_i32 = arith.constant 0 : i32
    %c0_i32_0 = arith.constant 0 : i32
    return %arg0, %c0_i32 : i32, i32
  }
  func.func @transform_1(%arg0: i32, %arg1: i32) -> (i32, i32) {
    %c0_i32 = arith.constant 0 : i32
    %c0_i32_0 = arith.constant 0 : i32
    %c0_i32_1 = arith.constant 0 : i32
    return %c0_i32, %c0_i32_0 : i32, i32
  }
  func.func @transform_2(%arg0: i32, %arg1: i32) -> (i32, i32) {
    %c0_i32 = arith.constant 0 : i32
    %c0_i32_0 = arith.constant 0 : i32
    %c0_i32_1 = arith.constant 0 : i32
    return %c0_i32, %c0_i32_0 : i32, i32
  }
  func.func @transform_3(%arg0: i32, %arg1: i32) -> (i32, i32) {
    %c0_i32 = arith.constant 0 : i32
    return %arg0, %arg1 : i32, i32
  }
  func.func @transform_4(%arg0: i32, %arg1: i32) -> (i32, i32) {
    %c0_i32 = arith.constant 0 : i32
    %c0_i32_0 = arith.constant 0 : i32
    return %arg0, %c0_i32 : i32, i32
  }
}

</mosaic_0001>

<bundles_post_ra>
// kernel: tpu_custom_call.1
= control target key start
LH: loop header
LB: loop body
LE: loop exit
PB: predicated region body
PF: predicated region fallthrough
CT: control target
= control target key end

     0   :  { %10 = vsyncpa [#allocation3], 0  ;;  %s1848_s0 = inlined_call_operand.hbm [shape: f32[16,640], index: 0, kind: input, shape index: {}]   ;;  %s1849_s1 = inlined_call_operand.hbm [shape: bf16[640,256], index: 1, kind: input, shape index: {}]   ;;  %s1850_s2 = inlined_call_operand.hbm [shape: f32[1,256], index: 2, kind: input, shape index: {}]   ;;  %s1851_s3 = inlined_call_operand.hbm [shape: bf16[16,256], index: 3, kind: output, shape index: {0}]   ;;  %s1852_s4 = inlined_call_operand.hbm [shape: f32[16,640], index: 4, kind: output, shape index: {1}]  }
   0x1   :  { %11 = vsyncpa [#allocation6], 0 }
   0x2   :  { %12 = vsyncpa [#allocation4], 0  ;;  %s31_s17 = sshll.u32 %s1849_s1, 4  ;;  %s32_s17 = int_to_ptr.hbm [resolvable:$true] %s31_s17 }
   0x3   :  { %13 = vsyncpa [#allocation10], 0  ;;  %s1447_s18 = smov [#allocation5]   ;;  %s18_s22 = sshll.u32 %s1848_s0, 4  ;;  %s19_s22 = int_to_ptr.hbm [resolvable:$true] %s18_s22 }
   0x4   :  { %s33_s19 = sshll.u32 %s1447_s18, 4  ;;  %s1448_s23 = smov 128   ;;  %s34_s19 = int_to_ptr.vmem [resolvable:$true] %s33_s19 }
   0x5   :  { %s1449_s24 = smov 8   ;;  %s1450_s25 = smov [#allocation2]  }
   0x6   :  { %39 = dma.hbm_to_vmem [thread:$0]  %s32_s17, 10240, %s34_s19, [#allocation6], %s1448_s23, %s1448_s23, %s1449_s24  }
   0x7   :  { %s20_s26 = sshll.u32 %s1450_s25, 4  ;;  %s1451_s1 = smov 640   ;;  %s21_s26 = int_to_ptr.vmem [resolvable:$true] %s20_s26 }
   0x8   :  { %s1452_s27 = smov 40   ;;  %s45_s0 = sshll.u32 %s1850_s2, 4  ;;  %s46_s0 = int_to_ptr.hbm [resolvable:$true] %s45_s0 }
   0x9   :  { %26 = dma.hbm_to_vmem [thread:$0]  %s19_s22, 1280, %s21_s26, [#allocation3], %s1451_s1, %s1451_s1, %s1452_s27  }
   0xa   :  { %s1453_s30 = smov [#allocation7]  }
   0xb   :  { %s47_s5 = sshll.u32 %s1453_s30, 4  ;;  %s48_s5 = int_to_ptr.vmem [resolvable:$true] %s47_s5 }
   0xc   :  { %50 = dma.hbm_to_vmem [thread:$0]  %s46_s0, 32, %s48_s5, [#allocation6]  }
   0xd   :  { %1439 = dma.done.wait [#allocation3], 1280  }
   0xe   :  { %1440 = vsyncadd [#allocation3], 4294966016 }
   0xf   :  { %1441 = dma.done.wait [#allocation6], 10272  }
  0x10   :  { %1442 = vsyncadd [#allocation6], 4294957024  ;;  %v968_v0 = vld [vmem:[#allocation5 + $0x70] sm:$0xf]  ;;  %v1245_v1 = vld [vmem:[#allocation5 + $0x74] sm:$0xf0] }
  0x11   :  { %v1032_v2 = vld [vmem:[#allocation5 + $0xf0] sm:$0xf]  ;;  %v1496_v3 = vor.u32 %v1245_v1, %v968_v0  ;;  %v1261_v4 = vld [vmem:[#allocation5 + $0xf4] sm:$0xf0]  ;;  %v960_v9 = vld [vmem:[#allocation5 + $0x60] sm:$0xf] }
  0x12   :  { %v1096_v5 = vld [vmem:[#allocation5 + $0x170] sm:$0xf]  ;;  %v1277_v6 = vld [vmem:[#allocation5 + $0x174] sm:$0xf0]  ;;  %v1498_v7 = vor.u32 %v1261_v4, %v1032_v2  ;;  %v1243_v10 = vld [vmem:[#allocation5 + $0x64] sm:$0xf0] }
  0x13   :  { %v1500_v8 = vor.u32 %v1277_v6, %v1096_v5  ;;  %v1024_v11 = vld [vmem:[#allocation5 + $0xe0] sm:$0xf]  ;;  %564 = vmatpush.bf16.msra.mxu0 %v1496_v3  ;;  %v1503_v12 = vor.u32 %v1243_v10, %v960_v9  ;;  %v1259_v13 = vld [vmem:[#allocation5 + $0xe4] sm:$0xf0]  ;;  %v1160_v14 = vld [vmem:[#allocation5 + $0x1f0] sm:$0xf] }
  0x14   :  { %v1293_v15 = vld [vmem:[#allocation5 + $0x1f4] sm:$0xf0]  ;;  %578 = vmatpush.bf16.msra.mxu1 %v1498_v7  ;;  %v1507_v16 = vor.u32 %v1259_v13, %v1024_v11  ;;  %v1088_v18 = vld [vmem:[#allocation5 + $0x160] sm:$0xf]  ;;  %v1275_v19 = vld [vmem:[#allocation5 + $0x164] sm:$0xf0] }
  0x15   :  { %592 = vmatpush.bf16.msra.mxu2 %v1500_v8  ;;  %v1509_v17 = vor.u32 %v1293_v15, %v1160_v14  ;;  %v952_v20 = vld [vmem:[#allocation5 + $0x50] sm:$0xf]  ;;  %v1511_v21 = vor.u32 %v1275_v19, %v1088_v18  ;;  %v1241_v22 = vld [vmem:[#allocation5 + $0x54] sm:$0xf0]  ;;  %v1152_v25 = vld [vmem:[#allocation5 + $0x1e0] sm:$0xf] }
  0x16   :  { %v1016_v23 = vld [vmem:[#allocation5 + $0xd0] sm:$0xf]  ;;  %v1257_v24 = vld [vmem:[#allocation5 + $0xd4] sm:$0xf0]  ;;  %v1291_v26 = vld [vmem:[#allocation5 + $0x1e4] sm:$0xf0]  ;;  %v1515_v28 = vor.u32 %v1241_v22, %v952_v20 }
  0x17   :  { %1876 = vst [vmem:[#allocation15_spill] sm:$0xff] %v1509_v17  ;;  %606 = vmatpush.bf16.msra.mxu3 %v1509_v17  ;;  %v1080_v27 = vld [vmem:[#allocation5 + $0x150] sm:$0xf]  ;;  %565 = vmatpush.bf16.msra.mxu0 %v1503_v12  ;;  %v1517_v29 = vor.u32 %v1291_v26, %v1152_v25  ;;  %v1273_v30 = vld [vmem:[#allocation5 + $0x154] sm:$0xf0]  ;;  %v1521_v33 = vor.u32 %v1257_v24, %v1016_v23  ;;  %s1454_s2 = smov [#allocation8]  }
  0x18   :  { %v944_v31 = vld [vmem:[#allocation5 + $0x40] sm:$0xf]  ;;  %v1239_v32 = vld [vmem:[#allocation5 + $0x44] sm:$0xf0]  ;;  %579 = vmatpush.bf16.msra.mxu1 %v1507_v16  ;;  %v1523_v34 = vor.u32 %v1273_v30, %v1080_v27  ;;  %v1144_v37 = vld [vmem:[#allocation5 + $0x1d0] sm:$0xf] }
  0x19   :  { %1877 = vst [vmem:[#allocation16_spill] sm:$0xff] %v1517_v29  ;;  %593 = vmatpush.bf16.msra.mxu2 %v1511_v21  ;;  %v1008_v35 = vld [vmem:[#allocation5 + $0xc0] sm:$0xf]  ;;  %v1255_v36 = vld [vmem:[#allocation5 + $0xc4] sm:$0xf0]  ;;  %v1529_v42 = vor.u32 %v1239_v32, %v944_v31  ;;  %s876_s6 = sshll.u32 %s1454_s2, 4  ;;  %s877_s6 = int_to_ptr.vmem [resolvable:$true] %s876_s6 }
  0x1a   :  { %v1289_v38 = vld [vmem:[#allocation5 + $0x1d4] sm:$0xf0]  ;;  %v1072_v39 = vld [vmem:[#allocation5 + $0x140] sm:$0xf]  ;;  %v1271_v40 = vld [vmem:[#allocation5 + $0x144] sm:$0xf0]  ;;  %v1533_v45 = vor.u32 %v1255_v36, %v1008_v35 }
  0x1b   :  { %607 = vmatpush.bf16.msra.mxu3 %v1517_v29  ;;  %v1526_v41 = vor.u32 %v1289_v38, %v1144_v37  ;;  %566 = vmatpush.bf16.msra.mxu0 %v1515_v28  ;;  %v1136_v43 = vld [vmem:[#allocation5 + $0x1c0] sm:$0xf]  ;;  %v1287_v44 = vld [vmem:[#allocation5 + $0x1c4] sm:$0xf0]  ;;  %v1535_v46 = vor.u32 %v1271_v40, %v1072_v39  ;;  %v936_v47 = vld [vmem:[#allocation5 + $0x30] sm:$0xf] }
  0x1c   :  { %580 = vmatpush.bf16.msra.mxu1 %v1521_v33  ;;  %v1237_v48 = vld [vmem:[#allocation5 + $0x34] sm:$0xf0]  ;;  %v1000_v49 = vld [vmem:[#allocation5 + $0xb0] sm:$0xf]  ;;  %v1538_v53 = vor.u32 %v1287_v44, %v1136_v43  ;;  %v928_v59 = vld [vmem:[#allocation5 + $0x20] sm:$0xf] }
  0x1d   :  { %1878 = vst [vmem:[#allocation17_spill] sm:$0xff] %v1526_v41  ;;  %594 = vmatpush.bf16.msra.mxu2 %v1523_v34  ;;  %v1253_v50 = vld [vmem:[#allocation5 + $0xb4] sm:$0xf0]  ;;  %v1064_v51 = vld [vmem:[#allocation5 + $0x130] sm:$0xf]  ;;  %v1541_v54 = vor.u32 %v1237_v48, %v936_v47  ;;  %s878_s9 = sshll.u32 %s1851_s3, 4  ;;  %s879_s9 = int_to_ptr.hbm [resolvable:$true] %s878_s9 }
  0x1e   :  { %v1269_v52 = vld [vmem:[#allocation5 + $0x134] sm:$0xf0]  ;;  %1879 = vst [vmem:[#allocation18_spill] sm:$0xff] %v1538_v53  ;;  %v1128_v55 = vld [vmem:[#allocation5 + $0x1b0] sm:$0xf]  ;;  %v1545_v57 = vor.u32 %v1253_v50, %v1000_v49  ;;  %s1455_s3 = smov [#allocation9]  }
  0x1f   :  { %608 = vmatpush.bf16.msra.mxu3 %v1526_v41  ;;  %567 = vmatpush.bf16.msra.mxu0 %v1529_v42  ;;  %v1285_v56 = vld [vmem:[#allocation5 + $0x1b4] sm:$0xf0]  ;;  %v1547_v58 = vor.u32 %v1269_v52, %v1064_v51  ;;  %v1235_v60 = vld [vmem:[#allocation5 + $0x24] sm:$0xf0]  ;;  %v992_v61 = vld [vmem:[#allocation5 + $0xa0] sm:$0xf] }
  0x20   :  { %581 = vmatpush.bf16.msra.mxu1 %v1533_v45  ;;  %v1251_v62 = vld [vmem:[#allocation5 + $0xa4] sm:$0xf0]  ;;  %v1056_v63 = vld [vmem:[#allocation5 + $0x120] sm:$0xf]  ;;  %v1550_v1 = vor.u32 %v1285_v56, %v1128_v55  ;;  %v1553_v2 = vor.u32 %v1235_v60, %v928_v59  ;;  %v920_v10 = vld [vmem:[#allocation5 + $0x10] sm:$0xf] }
  0x21   :  { %595 = vmatpush.bf16.msra.mxu2 %v1535_v46  ;;  %1880 = vst [vmem:[#allocation19_spill] sm:$0xff] %v1547_v58  ;;  %v1267_v0 = vld [vmem:[#allocation5 + $0x124] sm:$0xf0]  ;;  %v1120_v4 = vld [vmem:[#allocation5 + $0x1a0] sm:$0xf]  ;;  %v1557_v6 = vor.u32 %v1251_v62, %v992_v61  ;;  %s889_s10 = sshll.u32 %s1455_s3, 4  ;;  %s890_s10 = int_to_ptr.vmem [resolvable:$true] %s889_s10 }
  0x22   :  { %1881 = vst [vmem:[#allocation20_spill] sm:$0xff] %v1550_v1  ;;  %v1283_v5 = vld [vmem:[#allocation5 + $0x1a4] sm:$0xf0]  ;;  %v1559_v9 = vor.u32 %v1267_v0, %v1056_v63  ;;  %v1233_v11 = vld [vmem:[#allocation5 + $0x14] sm:$0xf0]  ;;  %s891_s13 = sshll.u32 %s1852_s4, 4  ;;  %s892_s13 = int_to_ptr.hbm [resolvable:$true] %s891_s13 }
  0x23   :  { %609 = vmatpush.bf16.msra.mxu3 %v1538_v53  ;;  %568 = vmatpush.bf16.msra.mxu0 %v1541_v54  ;;  %v984_v13 = vld [vmem:[#allocation5 + $0x90] sm:$0xf]  ;;  %v1249_v14 = vld [vmem:[#allocation5 + $0x94] sm:$0xf0]  ;;  %v1562_v19 = vor.u32 %v1283_v5, %v1120_v4  ;;  %v912_v20 = vld [vmem:[#allocation5] sm:$0xf]  ;;  %v1565_v22 = vor.u32 %v1233_v11, %v920_v10 }
  0x24   :  { %582 = vmatpush.bf16.msra.mxu1 %v1545_v57  ;;  %1882 = vst [vmem:[#allocation21_spill] sm:$0xff] %v1559_v9  ;;  %v1048_v15 = vld [vmem:[#allocation5 + $0x110] sm:$0xf]  ;;  %v1265_v18 = vld [vmem:[#allocation5 + $0x114] sm:$0xf0]  ;;  %v1569_v26 = vor.u32 %v1249_v14, %v984_v13 }
  0x25   :  { %596 = vmatpush.bf16.msra.mxu2 %v1547_v58  ;;  %1883 = vst [vmem:[#allocation22_spill] sm:$0xff] %v1562_v19  ;;  %v1231_v23 = vld [vmem:[#allocation5 + $0x4] sm:$0xf0]  ;;  %v1112_v24 = vld [vmem:[#allocation5 + $0x190] sm:$0xf]  ;;  %v1571_v27 = vor.u32 %v1265_v18, %v1048_v15  ;;  %v148_v14 = vld [vmem:[#allocation2 + $0x28] sm:$0xff] }
  0x26   :  { %v1281_v25 = vld [vmem:[#allocation5 + $0x194] sm:$0xf0]  ;;  %v976_v30 = vld [vmem:[#allocation5 + $0x80] sm:$0xf]  ;;  %v1247_v31 = vld [vmem:[#allocation5 + $0x84] sm:$0xf0]  ;;  %v1577_v44 = vor.u32 %v1231_v23, %v912_v20 }
  0x27   :  { %610 = vmatpush.bf16.msra.mxu3 %v1550_v1  ;;  %569 = vmatpush.bf16.msra.mxu0 %v1553_v2  ;;  %1884 = vst [vmem:[#allocation23_spill] sm:$0xff] %v1571_v27  ;;  %v1224_v32 = vld [vmem:[#allocation5 + $0x270] sm:$0xf]  ;;  %v1309_v35 = vld [vmem:[#allocation5 + $0x274] sm:$0xf0]  ;;  %v1574_v38 = vor.u32 %v1281_v25, %v1112_v24  ;;  %v1581_v50 = vor.u32 %v1247_v31, %v976_v30 }
  0x28   :  { %583 = vmatpush.bf16.msra.mxu1 %v1557_v6  ;;  %v1244_v36 = vld [vmem:[#allocation5 + $0x74] sm:$0xf]  ;;  %v970_v37 = vld [vmem:[#allocation5 + $0x78] sm:$0xf0]  ;;  %v1040_v39 = vld [vmem:[#allocation5 + $0x100] sm:$0xf]  ;;  %v1583_v51 = vor.u32 %v1309_v35, %v1224_v32 }
  0x29   :  { %597 = vmatpush.bf16.msra.mxu2 %v1559_v9  ;;  %1885 = vst [vmem:[#allocation24_spill] sm:$0xff] %v1574_v38  ;;  %v1263_v40 = vld [vmem:[#allocation5 + $0x104] sm:$0xf0]  ;;  %v1260_v43 = vld [vmem:[#allocation5 + $0xf4] sm:$0xf]  ;;  %v1585_v56 = vor.u32 %v1244_v36, %v970_v37  ;;  %v145_v37 = vld [vmem:[#allocation2 + $0x10] sm:$0xff] }
  0x2a   :  { %v1034_v47 = vld [vmem:[#allocation5 + $0xf8] sm:$0xf0]  ;;  %v1104_v48 = vld [vmem:[#allocation5 + $0x180] sm:$0xf]  ;;  %v1279_v49 = vld [vmem:[#allocation5 + $0x184] sm:$0xf0]  ;;  %v1587_v59 = vor.u32 %v1263_v40, %v1040_v39 }
  0x2b   :  { %611 = vmatpush.bf16.msra.mxu3 %v1562_v19  ;;  %570 = vmatpush.bf16.msra.mxu0 %v1565_v22  ;;  %1886 = vst [vmem:[#allocation25_spill] sm:$0xff] %v1581_v50  ;;  %v1276_v52 = vld [vmem:[#allocation5 + $0x174] sm:$0xf]  ;;  %v1098_v55 = vld [vmem:[#allocation5 + $0x178] sm:$0xf0]  ;;  %v1590_v62 = vor.u32 %v1260_v43, %v1034_v47  ;;  %v1592_v63 = vor.u32 %v1279_v49, %v1104_v48  ;;  %v150_v39 = vld [vmem:[#allocation2 + $0x38] sm:$0xff] }
  0x2c   :  { %584 = vmatpush.bf16.msra.mxu1 %v1569_v26  ;;  %1887 = vst [vmem:[#allocation26_spill] sm:$0xff] %v1583_v51  ;;  %v1216_v60 = vld [vmem:[#allocation5 + $0x260] sm:$0xf]  ;;  %v1307_v61 = vld [vmem:[#allocation5 + $0x264] sm:$0xf0]  ;;  %v143_v5 = vld [vmem:[#allocation2] sm:$0xff]  ;;  %v1595_v10 = vor.u32 %v1276_v52, %v1098_v55  ;;  %v1615_v47 = vpack.c.bf16 %v150_v39, %v145_v37 }
  0x2d   :  { %598 = vmatpush.bf16.msra.mxu2 %v1571_v27  ;;  %1888 = vst [vmem:[#allocation27_spill] sm:$0xff] %v1587_v59  ;;  %v1242_v0 = vld [vmem:[#allocation5 + $0x64] sm:$0xf]  ;;  %v962_v4 = vld [vmem:[#allocation5 + $0x68] sm:$0xf0]  ;;  %v1599_v15 = vor.u32 %v1307_v61, %v1216_v60  ;;  %v1601_v24 = vpack.c.bf16 %v148_v14, %v143_v5  ;;  %v151_v49 = vld [vmem:[#allocation2 + $0x40] sm:$0xff] }
  0x2e   :  { %1889 = vst [vmem:[#allocation28_spill] sm:$0xff] %v1592_v63  ;;  %v1258_v11 = vld [vmem:[#allocation5 + $0xe4] sm:$0xf]  ;;  %v1026_v13 = vld [vmem:[#allocation5 + $0xe8] sm:$0xf0]  ;;  %v1605_v25 = vor.u32 %v1242_v0, %v962_v4 }
  0x2f   :  { %612 = vmatpush.bf16.msra.mxu3 %v1574_v38  ;;  %571 = vmatpush.bf16.msra.mxu0 %v1577_v44  ;;  %1890 = vst [vmem:[#allocation29_spill] sm:$0xff] %v1599_v15  ;;  %v1208_v18 = vld [vmem:[#allocation5 + $0x250] sm:$0xf]  ;;  %v1274_v20 = vld [vmem:[#allocation5 + $0x164] sm:$0xf]  ;;  %v1609_v35 = vor.u32 %v1258_v11, %v1026_v13  ;;  %v146_v48 = vld [vmem:[#allocation2 + $0x18] sm:$0xff] }
  0x30   :  { %585 = vmatpush.bf16.msra.mxu1 %v1581_v50  ;;  %v1090_v23 = vld [vmem:[#allocation5 + $0x168] sm:$0xf0]  ;;  %v1305_v30 = vld [vmem:[#allocation5 + $0x254] sm:$0xf0]  ;;  %v1240_v31 = vld [vmem:[#allocation5 + $0x54] sm:$0xf]  ;;  %v1620_v61 = vpack.c.bf16 %v151_v49, %v146_v48 }
  0x31   :  { %599 = vmatpush.bf16.msra.mxu2 %v1587_v59  ;;  %v954_v32 = vld [vmem:[#allocation5 + $0x58] sm:$0xf0]  ;;  %v1256_v36 = vld [vmem:[#allocation5 + $0xd4] sm:$0xf]  ;;  %v1612_v40 = vor.u32 %v1274_v20, %v1090_v23  ;;  %v1618_v52 = vor.u32 %v1305_v30, %v1208_v18  ;;  %v1200_v4 = vld [vmem:[#allocation5 + $0x240] sm:$0xf] }
  0x32   :  { %v1018_v43 = vld [vmem:[#allocation5 + $0xd8] sm:$0xf0]  ;;  %572 = vmatmul.bf16.vlgmr.msra.gmra.mxu0 %v1601_v24  ;;  %v1272_v55 = vld [vmem:[#allocation5 + $0x154] sm:$0xf]  ;;  %v1623_v0 = vor.u32 %v1240_v31, %v954_v32  ;;  %v1303_v5 = vld [vmem:[#allocation5 + $0x244] sm:$0xf0] }
  0x33   :  { %620 = vmatpush.bf16.msrb.mxu0 %v1583_v51  ;;  %613 = vmatpush.bf16.msra.mxu3 %v1592_v63  ;;  %1891 = vst [vmem:[#allocation30_spill] sm:$0xff] %v1618_v52  ;;  %v1082_v60 = vld [vmem:[#allocation5 + $0x158] sm:$0xf0]  ;;  %v1238_v11 = vld [vmem:[#allocation5 + $0x44] sm:$0xf]  ;;  %v1627_v13 = vor.u32 %v1256_v36, %v1018_v43  ;;  %v1636_v37 = vor.u32 %v1303_v5, %v1200_v4 }
  0x34   :  { %634 = vmatpush.bf16.msrb.mxu1 %v1585_v56  ;;  %600 = vmatmul.bf16.vlgmr.msra.gmra.mxu2 %v1615_v47  ;;  %v946_v14 = vld [vmem:[#allocation5 + $0x48] sm:$0xf0]  ;;  %v144_v18 = vld [vmem:[#allocation2 + $0x8] sm:$0xff]  ;;  %v149_v20 = vld [vmem:[#allocation2 + $0x30] sm:$0xff]  ;;  %v1631_v23 = vor.u32 %v1272_v55, %v1082_v60 }
  0x35   :  { %648 = vmatpush.bf16.msrb.mxu2 %v1590_v62  ;;  %v1254_v30 = vld [vmem:[#allocation5 + $0xc4] sm:$0xf]  ;;  %v1010_v31 = vld [vmem:[#allocation5 + $0xc8] sm:$0xf0]  ;;  %v1633_v32 = vpack.c.bf16 %v149_v20, %v144_v18  ;;  %1892 = vst [vmem:[#allocation31_spill] sm:$0xff] %v1636_v37  ;;  %v1639_v43 = vor.u32 %v1238_v11, %v946_v14 }
  0x36   :  { %614 = vmatmul.bf16.vlgmr.msra.gmra.mxu3 %v1620_v61  ;;  %v1270_v39 = vld [vmem:[#allocation5 + $0x144] sm:$0xf]  ;;  %v1074_v36 = vld [vmem:[#allocation5 + $0x148] sm:$0xf0]  ;;  %v1192_v48 = vld [vmem:[#allocation5 + $0x230] sm:$0xf]  ;;  %v1642_v55 = vor.u32 %v1254_v30, %v1010_v31 }
  0x37   :  { %662 = vmatpush.bf16.msrb.mxu3 %v1595_v10  ;;  %621 = vmatpush.bf16.msrb.mxu0 %v1599_v15  ;;  %v1301_v49 = vld [vmem:[#allocation5 + $0x234] sm:$0xf0]  ;;  %v1236_v60 = vld [vmem:[#allocation5 + $0x34] sm:$0xf]  ;;  %v938_v15 = vld [vmem:[#allocation5 + $0x38] sm:$0xf0]  ;;  %v1646_v4 = vor.u32 %v1270_v39, %v1074_v36 }
  0x38   :  { %635 = vmatpush.bf16.msrb.mxu1 %v1605_v25  ;;  %v1252_v5 = vld [vmem:[#allocation5 + $0xb4] sm:$0xf]  ;;  %v1002_v18 = vld [vmem:[#allocation5 + $0xb8] sm:$0xf0]  ;;  %v1649_v11 = vor.u32 %v1301_v49, %v1192_v48  ;;  %v1652_v30 = vor.u32 %v1236_v60, %v938_v15  ;;  %v1184_v31 = vld [vmem:[#allocation5 + $0x220] sm:$0xf] }
  0x39   :  { %649 = vmatpush.bf16.msrb.mxu2 %v1609_v35  ;;  %586 = vmatmul.bf16.vlgmr.msra.gmra.mxu1 %v1633_v32  ;;  %1893 = vst [vmem:[#allocation32_spill] sm:$0xff] %v1646_v4  ;;  %v1268_v14 = vld [vmem:[#allocation5 + $0x134] sm:$0xf]  ;;  %v1066_v20 = vld [vmem:[#allocation5 + $0x138] sm:$0xf0]  ;;  %v1655_v51 = vor.u32 %v1252_v5, %v1002_v18 }
  0x3a   :  { %1894 = vst [vmem:[#allocation33_spill] sm:$0xff] %v1649_v11  ;;  %v1234_v39 = vld [vmem:[#allocation5 + $0x24] sm:$0xf]  ;;  %v930_v36 = vld [vmem:[#allocation5 + $0x28] sm:$0xf0]  ;;  %v1658_v63 = vor.u32 %v1268_v14, %v1066_v20 }
  0x3b   :  { %663 = vmatpush.bf16.msrb.mxu3 %v1612_v40  ;;  %622 = vmatpush.bf16.msrb.mxu0 %v1618_v52  ;;  %v1299_v52 = vld [vmem:[#allocation5 + $0x224] sm:$0xf0]  ;;  %v1250_v48 = vld [vmem:[#allocation5 + $0xa4] sm:$0xf]  ;;  %v994_v49 = vld [vmem:[#allocation5 + $0xa8] sm:$0xf0]  ;;  %v1664_v38 = vor.u32 %v1234_v39, %v930_v36 }
  0x3c   :  { %636 = vmatpush.bf16.msrb.mxu1 %v1623_v0  ;;  %1895 = vst [vmem:[#allocation34_spill] sm:$0xff] %v1658_v63  ;;  %v1266_v15 = vld [vmem:[#allocation5 + $0x124] sm:$0xf]  ;;  %v1058_v60 = vld [vmem:[#allocation5 + $0x128] sm:$0xf0]  ;;  %v1667_v19 = vor.u32 %v1250_v48, %v994_v49 }
  0x3d   :  { %650 = vmatpush.bf16.msrb.mxu2 %v1627_v13  ;;  %v1176_v5 = vld [vmem:[#allocation5 + $0x210] sm:$0xf]  ;;  %v1297_v18 = vld [vmem:[#allocation5 + $0x214] sm:$0xf0]  ;;  %v1232_v14 = vld [vmem:[#allocation5 + $0x14] sm:$0xf]  ;;  %v1670_v1 = vor.u32 %v1266_v15, %v1058_v60 }
  0x3e   :  { %v922_v20 = vld [vmem:[#allocation5 + $0x18] sm:$0xf0]  ;;  %v1673_v59 = vor.u32 %v1297_v18, %v1176_v5  ;;  %v1295_v39 = vld [vmem:[#allocation5 + $0x204] sm:$0xf0]  ;;  %v1264_v36 = vld [vmem:[#allocation5 + $0x114] sm:$0xf] }
  0x3f   :  { %664 = vmatpush.bf16.msrb.mxu3 %v1631_v23  ;;  %623 = vmatpush.bf16.msrb.mxu0 %v1636_v37  ;;  %v1661_v37 = vor.u32 %v1299_v52, %v1184_v31  ;;  %1897 = vst [vmem:[#allocation36_spill] sm:$0xff] %v1670_v1  ;;  %v1248_v52 = vld [vmem:[#allocation5 + $0x94] sm:$0xf]  ;;  %v986_v31 = vld [vmem:[#allocation5 + $0x98] sm:$0xf0]  ;;  %v1676_v48 = vor.u32 %v1232_v14, %v922_v20 }
  0x40   :  { %637 = vmatpush.bf16.msrb.mxu1 %v1639_v43  ;;  %1898 = vst [vmem:[#allocation37_spill] sm:$0xff] %v1673_v59  ;;  %v1050_v53 = vld [vmem:[#allocation5 + $0x118] sm:$0xf0]  ;;  %v1230_v49 = vld [vmem:[#allocation5 + $0x4] sm:$0xf]  ;;  %v1679_v15 = vor.u32 %v1248_v52, %v986_v31  ;;  %v147_v18 = vld [vmem:[#allocation2 + $0x20] sm:$0xff] }
  0x41   :  { %651 = vmatpush.bf16.msrb.mxu2 %v1642_v55  ;;  %1896 = vst [vmem:[#allocation35_spill] sm:$0xff] %v1661_v37  ;;  %v914_v27 = vld [vmem:[#allocation5 + $0x8] sm:$0xf0]  ;;  %v1292_v41 = vld [vmem:[#allocation5 + $0x1f4] sm:$0xf]  ;;  %v1682_v5 = vor.u32 %v1264_v36, %v1050_v53  ;;  %v152_v20 = vld [vmem:[#allocation2 + $0x48] sm:$0xff] }
  0x42   :  { %v1162_v60 = vld [vmem:[#allocation5 + $0x1f8] sm:$0xf0]  ;;  %v1308_v9 = vld [vmem:[#allocation5 + $0x274] sm:$0xf]  ;;  %v978_v29 = vld [vmem:[#allocation5 + $0x88] sm:$0xf0]  ;;  %v1688_v52 = vor.u32 %v1230_v49, %v914_v27 }
  0x43   :  { %665 = vmatpush.bf16.msrb.mxu3 %v1646_v4  ;;  %624 = vmatpush.bf16.msrb.mxu0 %v1649_v11  ;;  %v1168_v11 = vld [vmem:[#allocation5 + $0x200] sm:$0xf]  ;;  %v1262_v58 = vld [vmem:[#allocation5 + $0x104] sm:$0xf]  ;;  %v1042_v4 = vld [vmem:[#allocation5 + $0x108] sm:$0xf0]  ;;  %v1690_v31 = vor.u32 %v1292_v41, %v1162_v60 }
  0x44   :  { %638 = vmatpush.bf16.msrb.mxu1 %v1652_v30  ;;  %v1685_v14 = vor.u32 %v1295_v39, %v1168_v11  ;;  %v1154_v17 = vld [vmem:[#allocation5 + $0x1e8] sm:$0xf0]  ;;  %v1698_v11 = vpack.c.bf16 %v152_v20, %v147_v18  ;;  %v1700_v39 = vor.u32 %v1262_v58, %v1042_v4  ;;  %v1146_v27 = vld [vmem:[#allocation5 + $0x1d8] sm:$0xf0]  ;;  %v1304_v58 = vld [vmem:[#allocation5 + $0x254] sm:$0xf] }
  0x45   :  { %652 = vmatpush.bf16.msrb.mxu2 %v1655_v51  ;;  %v1218_v50 = vld [vmem:[#allocation5 + $0x268] sm:$0xf0]  ;;  %v1130_v49 = vld [vmem:[#allocation5 + $0x1b8] sm:$0xf0]  ;;  %v1300_v60 = vld [vmem:[#allocation5 + $0x234] sm:$0xf] }
  0x46   :  { %v1202_v4 = vld [vmem:[#allocation5 + $0x248] sm:$0xf0]  ;;  %v1282_v20 = vld [vmem:[#allocation5 + $0x1a4] sm:$0xf] }
  0x47   :  { %666 = vmatpush.bf16.msrb.mxu3 %v1658_v63  ;;  %625 = vmatpush.bf16.msrb.mxu0 %v1661_v37  ;;  %v1226_v63 = vld [vmem:[#allocation5 + $0x278] sm:$0xf0]  ;;  %v1246_v37 = vld [vmem:[#allocation5 + $0x84] sm:$0xf] }
  0x48   :  { %639 = vmatpush.bf16.msrb.mxu1 %v1664_v38  ;;  %v1693_v53 = vor.u32 %v1308_v9, %v1226_v63  ;;  %v1695_v36 = vor.u32 %v1246_v37, %v978_v29  ;;  %v1288_v9 = vld [vmem:[#allocation5 + $0x1d4] sm:$0xf]  ;;  %v1210_v63 = vld [vmem:[#allocation5 + $0x258] sm:$0xf0]  ;;  %v1302_v37 = vld [vmem:[#allocation5 + $0x244] sm:$0xf] }
  0x49   :  { %653 = vmatpush.bf16.msrb.mxu2 %v1667_v19 }
  0x4b   :  { %667 = vmatpush.bf16.msrb.mxu3 %v1670_v1  ;;  %626 = vmatpush.bf16.msrb.mxu0 %v1673_v59  ;;  %v1290_v1 = vld [vmem:[#allocation5 + $0x1e4] sm:$0xf] }
  0x4c   :  { %640 = vmatpush.bf16.msrb.mxu1 %v1676_v48  ;;  %v1306_v59 = vld [vmem:[#allocation5 + $0x264] sm:$0xf]  ;;  %v1705_v41 = vor.u32 %v1290_v1, %v1154_v17  ;;  %v1717_v17 = vor.u32 %v1288_v9, %v1146_v27  ;;  %v1721_v1 = vor.u32 %v1304_v58, %v1210_v63  ;;  %v1122_v9 = vld [vmem:[#allocation5 + $0x1a8] sm:$0xf0] }
  0x4d   :  { %654 = vmatpush.bf16.msrb.mxu2 %v1679_v15  ;;  %v1709_v29 = vor.u32 %v1306_v59, %v1218_v50  ;;  %v1286_v50 = vld [vmem:[#allocation5 + $0x1c4] sm:$0xf]  ;;  %v1138_v59 = vld [vmem:[#allocation5 + $0x1c8] sm:$0xf0]  ;;  %v1739_v63 = vor.u32 %v1282_v20, %v1122_v9 }
  0x4e   :  { %v1298_v27 = vld [vmem:[#allocation5 + $0x224] sm:$0xf]  ;;  %v1186_v58 = vld [vmem:[#allocation5 + $0x228] sm:$0xf0] }
  0x4f   :  { %668 = vmatpush.bf16.msrb.mxu3 %v1682_v5  ;;  %627 = vmatpush.bf16.msrb.mxu0 %v1685_v14  ;;  %v1170_v20 = vld [vmem:[#allocation5 + $0x208] sm:$0xf0] }
  0x50   :  { %641 = vmatpush.bf16.msrb.mxu1 %v1688_v52 }
  0x51   :  { %655 = vmatpush.bf16.msrb.mxu2 %v1695_v36 }
  0x52   :  { %628 = vmatmul.bf16.vlgmr.msrb.gmra.mxu0 %v1698_v11 }
  0x53   :  { %676 = vmatpush.bf16.msra.mxu0 %v1690_v31  ;;  %669 = vmatpush.bf16.msrb.mxu3 %v1700_v39 }
  0x54   :  { %690 = vmatpush.bf16.msra.mxu1 %v1693_v53  ;;  %656 = vmatmul.bf16.vlgmr.msrb.gmra.mxu2 %v1633_v32  ;;  %v1284_v32 = vld [vmem:[#allocation5 + $0x1b4] sm:$0xf] }
  0x55   :  { %642 = vmatmul.bf16.vlgmr.msrb.gmra.mxu1 %v1601_v24  ;;  %720 = vmatpush.bf16.xpose.msra.mxu2 %v1496_v3  ;;  %v1725_v3 = vor.u32 %v1286_v50, %v1138_v59  ;;  %v1728_v24 = vor.u32 %v1302_v37, %v1202_v4  ;;  %v1732_v18 = vor.u32 %v1284_v32, %v1130_v49  ;;  %v1280_v50 = vld [vmem:[#allocation5 + $0x194] sm:$0xf]  ;;  %v1114_v59 = vld [vmem:[#allocation5 + $0x198] sm:$0xf0]  ;;  %v1278_v49 = vld [vmem:[#allocation5 + $0x184] sm:$0xf] }
  0x56   :  { %670 = vmatmul.bf16.vlgmr.msrb.gmra.mxu3 %v1615_v47  ;;  %v1194_v47 = vld [vmem:[#allocation5 + $0x238] sm:$0xf0]  ;;  %v1296_v37 = vld [vmem:[#allocation5 + $0x214] sm:$0xf]  ;;  %v1746_v32 = vor.u32 %v1280_v50, %v1114_v59 }
  0x57   :  { %677 = vmatpush.bf16.msra.mxu0 %v1705_v41  ;;  %734 = vmatpush.bf16.xpose.msra.mxu3 %v1585_v56  ;;  %v1735_v56 = vor.u32 %v1300_v60, %v1194_v47  ;;  %v1178_v4 = vld [vmem:[#allocation5 + $0x218] sm:$0xf0]  ;;  %v1106_v60 = vld [vmem:[#allocation5 + $0x188] sm:$0xf0]  ;;  %v1294_v47 = vld [vmem:[#allocation5 + $0x204] sm:$0xf] }
  0x58   :  { %691 = vmatpush.bf16.msra.mxu1 %v1709_v29  ;;  %v1753_v9 = vor.u32 %v1278_v49, %v1106_v60 }
  0x5b   :  { %678 = vmatpush.bf16.msra.mxu0 %v1717_v17 }
  0x5c   :  { %692 = vmatpush.bf16.msra.mxu1 %v1721_v1 }
  0x5d   :  { %721 = vmatpush.bf16.xpose.msra.mxu2 %v1503_v12  ;;  %v1742_v12 = vor.u32 %v1298_v27, %v1186_v58 }
  0x5f   :  { %679 = vmatpush.bf16.msra.mxu0 %v1725_v3  ;;  %735 = vmatpush.bf16.xpose.msra.mxu3 %v1605_v25  ;;  %v1749_v25 = vor.u32 %v1296_v37, %v1178_v4 }
  0x60   :  { %693 = vmatpush.bf16.msra.mxu1 %v1728_v24 }
  0x63   :  { %680 = vmatpush.bf16.msra.mxu0 %v1732_v18 }
  0x64   :  { %694 = vmatpush.bf16.msra.mxu1 %v1735_v56 }
  0x65   :  { %722 = vmatpush.bf16.xpose.msra.mxu2 %v1515_v28  ;;  %v1756_v28 = vor.u32 %v1294_v47, %v1170_v20 }
  0x67   :  { %681 = vmatpush.bf16.msra.mxu0 %v1739_v63  ;;  %736 = vmatpush.bf16.xpose.msra.mxu3 %v1623_v0 }
  0x68   :  { %695 = vmatpush.bf16.msra.mxu1 %v1742_v12 }
  0x6b   :  { %682 = vmatpush.bf16.msra.mxu0 %v1746_v32 }
  0x6c   :  { %696 = vmatpush.bf16.msra.mxu1 %v1749_v25 }
  0x6d   :  { %723 = vmatpush.bf16.xpose.msra.mxu2 %v1529_v42  ;;  %v1905_v42 = vld [vmem:[#allocation21_spill] sm:$0xff] }
  0x6f   :  { %683 = vmatpush.bf16.msra.mxu0 %v1753_v9  ;;  %737 = vmatpush.bf16.xpose.msra.mxu3 %v1639_v43 }
  0x70   :  { %697 = vmatpush.bf16.msra.mxu1 %v1756_v28 }
  0x72   :  { %684 = vmatmul.bf16.vlgmr.msra.gmra.mxu0 %v1620_v61 }
  0x73   :  { %748 = vmatpush.bf16.xpose.msrb.mxu0 %v1498_v7  ;;  %698 = vmatmul.bf16.vlgmr.msra.gmra.mxu1 %v1698_v11  ;;  %v1899_v7 = vld [vmem:[#allocation25_spill] sm:$0xff] }
  0x74   :  { %762 = vmatpush.bf16.xpose.msrb.mxu1 %v1590_v62 }
  0x75   :  { %724 = vmatpush.bf16.xpose.msra.mxu2 %v1541_v54  ;;  %v1908_v54 = vld [vmem:[#allocation23_spill] sm:$0xff] }
  0x77   :  { %738 = vmatpush.bf16.xpose.msra.mxu3 %v1652_v30 }
  0x7b   :  { %749 = vmatpush.bf16.xpose.msrb.mxu0 %v1507_v16  ;;  %v1901_v16 = vld [vmem:[#allocation32_spill] sm:$0xff] }
  0x7c   :  { %763 = vmatpush.bf16.xpose.msrb.mxu1 %v1609_v35  ;;  %v1913_v35 = vld [vmem:[#allocation24_spill] sm:$0xff] }
  0x7d   :  { %725 = vmatpush.bf16.xpose.msra.mxu2 %v1553_v2  ;;  %v1910_v2 = vld [vmem:[#allocation27_spill] sm:$0xff] }
  0x7f   :  { %739 = vmatpush.bf16.xpose.msra.mxu3 %v1664_v38  ;;  %v1912_v38 = vld [vmem:[#allocation22_spill] sm:$0xff] }
  0x83   :  { %750 = vmatpush.bf16.xpose.msrb.mxu0 %v1521_v33  ;;  %v1903_v33 = vld [vmem:[#allocation16_spill] sm:$0xff] }
  0x84   :  { %764 = vmatpush.bf16.xpose.msrb.mxu1 %v1627_v13 }
  0x85   :  { %726 = vmatpush.bf16.xpose.msra.mxu2 %v1565_v22 }
  0x87   :  { %740 = vmatpush.bf16.xpose.msra.mxu3 %v1676_v48 }
  0x8b   :  { %751 = vmatpush.bf16.xpose.msrb.mxu0 %v1533_v45  ;;  %v1906_v45 = vld [vmem:[#allocation17_spill] sm:$0xff] }
  0x8c   :  { %765 = vmatpush.bf16.xpose.msrb.mxu1 %v1642_v55  ;;  %v1914_v55 = vld [vmem:[#allocation28_spill] sm:$0xff] }
  0x8d   :  { %727 = vmatpush.bf16.xpose.msra.mxu2 %v1577_v44 }
  0x8f   :  { %741 = vmatpush.bf16.xpose.msra.mxu3 %v1688_v52 }
  0x93   :  { %752 = vmatpush.bf16.xpose.msrb.mxu0 %v1545_v57  ;;  %v1909_v57 = vld [vmem:[#allocation18_spill] sm:$0xff] }
  0x94   :  { %766 = vmatpush.bf16.xpose.msrb.mxu1 %v1655_v51 }
  0x95   :  { %776 = vmatpush.bf16.xpose.msrb.mxu2 %v1500_v8  ;;  %v1900_v8 = vld [vmem:[#allocation15_spill] sm:$0xff] }
  0x97   :  { %790 = vmatpush.bf16.xpose.msrb.mxu3 %v1595_v10  ;;  %v158_v10 = vld [vmem:[#allocation7] sm:$0x3] }
  0x98   :  { %v160_v61 = vperm.slane %v158_v10, 0  ;;  %v161_v30 = vperm.slane %v158_v10, 1  ;;  %v1919_v10 = vld [vmem:[#allocation33_spill] sm:$0xff] }
  0x9b   :  { %753 = vmatpush.bf16.xpose.msrb.mxu0 %v1557_v6 }
  0x9c   :  { %767 = vmatpush.bf16.xpose.msrb.mxu1 %v1667_v19  ;;  %v1911_v19 = vld [vmem:[#allocation20_spill] sm:$0xff] }
  0x9d   :  { %777 = vmatpush.bf16.xpose.msrb.mxu2 %v1511_v21  ;;  %v1902_v21 = vld [vmem:[#allocation19_spill] sm:$0xff] }
  0x9f   :  { %791 = vmatpush.bf16.xpose.msrb.mxu3 %v1612_v40 }
  0xa3   :  { %754 = vmatpush.bf16.xpose.msrb.mxu0 %v1569_v26 }
  0xa4   :  { %768 = vmatpush.bf16.xpose.msrb.mxu1 %v1679_v15 }
  0xa5   :  { %778 = vmatpush.bf16.xpose.msrb.mxu2 %v1523_v34  ;;  %v1904_v34 = vld [vmem:[#allocation34_spill] sm:$0xff] }
  0xa7   :  { %792 = vmatpush.bf16.xpose.msrb.mxu3 %v1631_v23 }
  0xab   :  { %755 = vmatpush.bf16.xpose.msrb.mxu0 %v1899_v7 }
  0xac   :  { %769 = vmatpush.bf16.xpose.msrb.mxu1 %v1695_v36 }
  0xad   :  { %779 = vmatpush.bf16.xpose.msrb.mxu2 %v1535_v46  ;;  %v1907_v46 = vld [vmem:[#allocation36_spill] sm:$0xff] }
  0xaf   :  { %793 = vmatpush.bf16.xpose.msrb.mxu3 %v1901_v16  ;;  %v573_v6 = vpop.f32.mrf.mxu0 }
  0xb0   :  { %v574_v43 = vadd.f32 %v573_v6, %v160_v61 }
  0xb3   :  { %804 = vmatpush.bf16.xpose.msra.mxu0 %v1900_v8 }
  0xb4   :  { %818 = vmatpush.bf16.xpose.msra.mxu1 %v1690_v31 }
  0xb5   :  { %780 = vmatpush.bf16.xpose.msrb.mxu2 %v1902_v21 }
  0xb6   :  { %v587_v22 = vpop.f32.mrf.mxu1 }
  0xb7   :  { %794 = vmatpush.bf16.xpose.msrb.mxu3 %v1904_v34  ;;  %v601_v26 = vpop.f32.mrf.mxu2  ;;  %v575_v44 = vpop.f32.mrf.mxu0  ;;  %v588_v48 = vadd.f32 %v587_v22, %v574_v43 }
  0xb9   :  { %v615_v62 = vpop.f32.mrf.mxu3  ;;  %v602_v31 = vadd.f32 %v601_v26, %v588_v48 }
  0xbb   :  { %805 = vmatpush.bf16.xpose.msra.mxu0 %v1903_v33 }
  0xbc   :  { %819 = vmatpush.bf16.xpose.msra.mxu1 %v1705_v41 }
  0xbd   :  { %781 = vmatpush.bf16.xpose.msrb.mxu2 %v1905_v42 }
  0xbe   :  { %v589_v51 = vpop.f32.mrf.mxu1 }
  0xbf   :  { %795 = vmatpush.bf16.xpose.msrb.mxu3 %v1907_v46  ;;  %v603_v40 = vpop.f32.mrf.mxu2 }
  0xc1   :  { %v617_v23 = vpop.f32.mrf.mxu3 }
  0xc3   :  { %806 = vmatpush.bf16.xpose.msra.mxu0 %v1906_v45 }
  0xc4   :  { %820 = vmatpush.bf16.xpose.msra.mxu1 %v1717_v17  ;;  %v616_v17 = vadd.f32 %v615_v62, %v602_v31  ;;  %v1918_v62 = vld [vmem:[#allocation31_spill] sm:$0xff] }
  0xc5   :  { %782 = vmatpush.bf16.xpose.msrb.mxu2 %v1908_v54 }
  0xc7   :  { %796 = vmatpush.bf16.xpose.msrb.mxu3 %v1682_v5 }
  0xcb   :  { %807 = vmatpush.bf16.xpose.msra.mxu0 %v1909_v57 }
  0xcc   :  { %821 = vmatpush.bf16.xpose.msra.mxu1 %v1725_v3 }
  0xcd   :  { %783 = vmatpush.bf16.xpose.msrb.mxu2 %v1910_v2 }
  0xcf   :  { %797 = vmatpush.bf16.xpose.msrb.mxu3 %v1700_v39  ;;  %v629_v0 = vpop.f32.mrf.mxu0  ;;  %v576_v39 = vadd.f32 %v575_v44, %v160_v61  ;;  %v1916_v44 = vld [vmem:[#allocation29_spill] sm:$0xff] }
  0xd0   :  { %v630_v50 = vadd.f32 %v629_v0, %v616_v17 }
  0xd1   :  { %v590_v3 = vadd.f32 %v589_v51, %v576_v39  ;;  %v1917_v51 = vld [vmem:[#allocation30_spill] sm:$0xff] }
  0xd2   :  { %v643_v13 = vpop.f32.mrf.mxu1  ;;  %v704_v47 = vmax.f32 %v630_v50, 0.0 }
  0xd3   :  { %808 = vmatpush.bf16.xpose.msra.mxu0 %v1911_v19  ;;  %v644_v5 = vadd.f32 %v643_v13, %v161_v30  ;;  %v604_v4 = vadd.f32 %v603_v40, %v590_v3 }
  0xd4   :  { %822 = vmatpush.bf16.xpose.msra.mxu1 %v1732_v18 }
  0xd7   :  { %v657_v15 = vpop.f32.mrf.mxu2  ;;  %v631_v52 = vpop.f32.mrf.mxu0 }
  0xd8   :  { %v658_v41 = vadd.f32 %v657_v15, %v644_v5 }
  0xd9   :  { %v671_v11 = vpop.f32.mrf.mxu3 }
  0xda   :  { %v645_v36 = vpop.f32.mrf.mxu1  ;;  %v672_v18 = vadd.f32 %v671_v11, %v658_v41 }
  0xdb   :  { %809 = vmatpush.bf16.xpose.msra.mxu0 %v1912_v38  ;;  %v646_v27 = vadd.f32 %v645_v36, %v161_v30  ;;  %v1915_v38 = vld [vmem:[#allocation26_spill] sm:$0xff] }
  0xdc   :  { %823 = vmatpush.bf16.xpose.msra.mxu1 %v1739_v63 }
  0xdf   :  { %v659_v58 = vpop.f32.mrf.mxu2 }
  0xe1   :  { %v673_v60 = vpop.f32.mrf.mxu3 }
  0xe3   :  { %810 = vmatpush.bf16.xpose.msra.mxu0 %v1913_v35 }
  0xe4   :  { %824 = vmatpush.bf16.xpose.msra.mxu1 %v1746_v32  ;;  %v660_v32 = vadd.f32 %v659_v58, %v646_v27 }
  0xe6   :  { %v674_v7 = vadd.f32 %v673_v60, %v660_v32 }
  0xeb   :  { %811 = vmatpush.bf16.xpose.msra.mxu0 %v1914_v55 }
  0xec   :  { %825 = vmatpush.bf16.xpose.msra.mxu1 %v1753_v9  ;;  %v618_v9 = vadd.f32 %v617_v23, %v604_v4 }
  0xee   :  { %v632_v21 = vadd.f32 %v631_v52, %v618_v9 }
  0xef   :  { %v685_v63 = vpop.f32.mrf.mxu0 }
  0xf0   :  { %v686_v59 = vadd.f32 %v685_v63, %v672_v18  ;;  %v699_v37 = vpop.f32.mrf.mxu1  ;;  %v706_v45 = vmax.f32 %v632_v21, 0.0 }
  0xf2   :  { %v700_v49 = vadd.f32 %v699_v37, %v686_v59 }
  0xf4   :  { %v705_v20 = vmax.f32 %v700_v49, 0.0 }
  0xf6   :  { %v708_v8 = vpack.c.bf16 %v705_v20, %v704_v47 }
  0xf7   :  { %v687_v16 = vpop.f32.mrf.mxu0 }
  0xf8   :  { %860 = vst [vmem:[#allocation8] sm:$0xff] %v708_v8  ;;  %v688_v33 = vadd.f32 %v687_v16, %v674_v7  ;;  %v701_v34 = vpop.f32.mrf.mxu1  ;;  %v712_v57 = vunpack.c.l.b16 %v708_v8  ;;  %v713_v2 = vunpack.c.h.b16 %v708_v8 }
  0xfa   :  { %v702_v42 = vadd.f32 %v701_v34, %v688_v33 }
  0xfc   :  { %v707_v46 = vmax.f32 %v702_v42, 0.0 }
  0xfe   :  { %v709_v54 = vpack.c.bf16 %v707_v46, %v706_v45 }
 0x100   :  { %v714_v6 = vunpack.c.l.b16 %v709_v54  ;;  %v715_v19 = vunpack.c.h.b16 %v709_v54  ;;  %861 = vst [vmem:[#allocation8 + $0x8] sm:$0xff] %v709_v54 }
 0x101   :  { %884 = dma.vmem_to_hbm [thread:$0]  %s877_s6, 256, %s879_s9, [#allocation4], %s1448_s23, %s1448_s23, %s1449_s24  }
 0x102   :  { %v716_v22 = vpack.c.b16 %v714_v6, %v712_v57  ;;  %v717_v26 = vpack.c.b16 %v715_v19, %v713_v2 }
 0x104   :  { %728 = vmatmul.bf16.vlgmr.msra.gmra.mxu2 %v716_v22  ;;  %742 = vmatmul.bf16.vlgmr.msra.gmra.mxu3 %v717_v26 }
 0x105   :  { %756 = vmatmul.bf16.vlgmr.msrb.gmra.mxu0 %v716_v22  ;;  %770 = vmatmul.bf16.vlgmr.msrb.gmra.mxu1 %v717_v26 }
 0x106   :  { %832 = vmatpush.bf16.xpose.msra.mxu2 %v1915_v38  ;;  %846 = vmatpush.bf16.xpose.msra.mxu3 %v1693_v53  ;;  %v1920_v53 = vld [vmem:[#allocation35_spill] sm:$0xff] }
 0x10e   :  { %833 = vmatpush.bf16.xpose.msra.mxu2 %v1916_v44  ;;  %847 = vmatpush.bf16.xpose.msra.mxu3 %v1709_v29  ;;  %v1921_v29 = vld [vmem:[#allocation37_spill] sm:$0xff] }
 0x114   :  { %784 = vmatmul.bf16.vlgmr.msrb.gmra.mxu2 %v716_v22  ;;  %798 = vmatmul.bf16.vlgmr.msrb.gmra.mxu3 %v717_v26 }
 0x115   :  { %812 = vmatmul.bf16.vlgmr.msra.gmra.mxu0 %v716_v22  ;;  %826 = vmatmul.bf16.vlgmr.msra.gmra.mxu1 %v717_v26 }
 0x116   :  { %834 = vmatpush.bf16.xpose.msra.mxu2 %v1917_v51  ;;  %848 = vmatpush.bf16.xpose.msra.mxu3 %v1721_v1 }
 0x11e   :  { %835 = vmatpush.bf16.xpose.msra.mxu2 %v1918_v62  ;;  %849 = vmatpush.bf16.xpose.msra.mxu3 %v1728_v24 }
 0x126   :  { %836 = vmatpush.bf16.xpose.msra.mxu2 %v1919_v10  ;;  %850 = vmatpush.bf16.xpose.msra.mxu3 %v1735_v56 }
 0x12e   :  { %837 = vmatpush.bf16.xpose.msra.mxu2 %v1920_v53  ;;  %851 = vmatpush.bf16.xpose.msra.mxu3 %v1742_v12 }
 0x136   :  { %838 = vmatpush.bf16.xpose.msra.mxu2 %v1921_v29  ;;  %852 = vmatpush.bf16.xpose.msra.mxu3 %v1749_v25 }
 0x13e   :  { %839 = vmatpush.bf16.xpose.msra.mxu2 %v1685_v14  ;;  %853 = vmatpush.bf16.xpose.msra.mxu3 %v1756_v28 }
 0x145   :  { %840 = vmatmul.bf16.vlgmr.msra.gmra.mxu2 %v716_v22  ;;  %854 = vmatmul.bf16.vlgmr.msra.gmra.mxu3 %v717_v26 }
 0x182   :  { %v757_v1 = vpop.f32.mrf.mxu0  ;;  %v771_v24 = vpop.f32.mrf.mxu1 }
 0x183   :  { %v772_v56 = vadd.f32 %v771_v24, %v757_v1 }
 0x185   :  { %863 = vst [vmem:[#allocation9 + $0x8] sm:$0xff] %v772_v56 }
 0x187   :  { %v729_v14 = vpop.f32.mrf.mxu2  ;;  %v743_v12 = vpop.f32.mrf.mxu3 }
 0x188   :  { %v744_v25 = vadd.f32 %v743_v12, %v729_v14 }
 0x18a   :  { %862 = vst [vmem:[#allocation9] sm:$0xff] %v744_v25  ;;  %v759_v28 = vpop.f32.mrf.mxu0  ;;  %v773_v35 = vpop.f32.mrf.mxu1 }
 0x18b   :  { %v774_v40 = vadd.f32 %v773_v35, %v759_v28 }
 0x18d   :  { %868 = vst [vmem:[#allocation9 + $0x30] sm:$0xff] %v774_v40 }
 0x18f   :  { %v731_v61 = vpop.f32.mrf.mxu2  ;;  %v745_v0 = vpop.f32.mrf.mxu3 }
 0x190   :  { %v746_v13 = vadd.f32 %v745_v0, %v731_v61 }
 0x192   :  { %867 = vst [vmem:[#allocation9 + $0x28] sm:$0xff] %v746_v13  ;;  %v813_v23 = vpop.f32.mrf.mxu0  ;;  %v827_v43 = vpop.f32.mrf.mxu1 }
 0x193   :  { %v828_v55 = vadd.f32 %v827_v43, %v813_v23 }
 0x195   :  { %865 = vst [vmem:[#allocation9 + $0x18] sm:$0xff] %v828_v55 }
 0x197   :  { %v785_v30 = vpop.f32.mrf.mxu2  ;;  %v799_v48 = vpop.f32.mrf.mxu3 }
 0x198   :  { %v800_v15 = vadd.f32 %v799_v48, %v785_v30 }
 0x19a   :  { %864 = vst [vmem:[#allocation9 + $0x10] sm:$0xff] %v800_v15  ;;  %v815_v5 = vpop.f32.mrf.mxu0  ;;  %v829_v52 = vpop.f32.mrf.mxu1 }
 0x19b   :  { %v830_v31 = vadd.f32 %v829_v52, %v815_v5 }
 0x19d   :  { %870 = vst [vmem:[#allocation9 + $0x40] sm:$0xff] %v830_v31 }
 0x19f   :  { %v787_v36 = vpop.f32.mrf.mxu2  ;;  %v801_v11 = vpop.f32.mrf.mxu3 }
 0x1a0   :  { %v802_v39 = vadd.f32 %v801_v11, %v787_v36 }
 0x1a2   :  { %869 = vst [vmem:[#allocation9 + $0x38] sm:$0xff] %v802_v39 }
 0x1c8   :  { %v841_v41 = vpop.f32.mrf.mxu2  ;;  %v855_v17 = vpop.f32.mrf.mxu3 }
 0x1c9   :  { %v856_v3 = vadd.f32 %v855_v17, %v841_v41 }
 0x1cb   :  { %866 = vst [vmem:[#allocation9 + $0x20] sm:$0xff] %v856_v3 }
 0x1d0   :  { %v843_v18 = vpop.f32.mrf.mxu2  ;;  %v857_v27 = vpop.f32.mrf.mxu3 }
 0x1d1   :  { %v858_v58 = vadd.f32 %v857_v27, %v843_v18 }
 0x1d3   :  { %871 = vst [vmem:[#allocation9 + $0x48] sm:$0xff] %v858_v58 }
 0x1d4   :  { %897 = dma.vmem_to_hbm [thread:$0]  %s890_s10, 1280, %s892_s13, [#allocation10], %s1451_s1, %s1451_s1, %s1452_s27  }
 0x1d5   :  { %1443 = dma.done.wait [#allocation4], 256  }
 0x1d6   :  { %1444 = vsyncadd [#allocation4], 4294967040 }
 0x1d7   :  { %1445 = dma.done.wait [#allocation10], 1280  }
 0x1d8   :  { %1446 = vsyncadd [#allocation10], 4294966016 }
 0x1d9   :  { %906 = vsyncpa [#allocation3], 1 }
 0x1da   :  { %907 = vsyncpa [#allocation6], 1 }
 0x1db   :  { %908 = vsyncpa [#allocation4], 1 }
 0x1dc   :  { %909 = vsyncpa [#allocation10], 1 }

</bundles_post_ra>
